<compile_context>
chip_gen: v6e
topology: v6e:2x2x1
jax: 0.10.0
libtpu: 0.0.40
codegen_flags: <defaults>
</compile_context>

<pallas_src>
import jax
import jax.numpy as jnp
from jax.experimental import pallas as pl
from jax.experimental.pallas import tpu as pltpu


def _center_intersection_kernel(emb_ref, w1_ref, b1_ref, w2_ref, b2_ref, o_ref):
    # emb_ref: (BB, N, GD) ; w*: (GD, GD) block-diagonal, already transposed ;
    # b*: (1, GD) ; o_ref: (BB, GD).  All f32 compute (kernel is HBM-bound).
    emb = emb_ref[...].astype(jnp.float32)               # (BB, N, GD)
    bb, n, gd = emb.shape

    # Flatten (BB, N) into one M dimension; free re-view when N % 8 == 0.
    x = emb.reshape(bb * n, gd)                           # (BB*N, GD)

    # layer1 + relu
    h = jnp.dot(x, w1_ref[...], preferred_element_type=jnp.float32) + b1_ref[...]
    h = jnp.maximum(h, 0.0)

    # layer2 -> attention logits
    logits = jnp.dot(h, w2_ref[...], preferred_element_type=jnp.float32) + b2_ref[...]
    logits = logits.reshape(bb, n, gd)                    # (BB, N, GD)

    # softmax over N (torch dim=1), fused with the weighted sum over N.
    # Lane groups never interact: reductions are over the sublane (N) axis.
    m = jnp.max(logits, axis=1, keepdims=True)            # (BB, 1, GD)
    e = jnp.exp(logits - m)                               # (BB, N, GD)
    s = jnp.sum(e, axis=1)                                # (BB, GD)
    num = jnp.sum(e * emb, axis=1)                        # (BB, GD)

    o_ref[...] = (num / s).astype(o_ref.dtype)            # lane-dense store


def _pick_block_rows(rows, target=512):
    """Packed rows per grid step: multiple of 8 (or the full extent), large
    enough to amortize per-step overhead, grid >= 2 when possible (v7x)."""
    if rows > target:
        return target                                     # multiple of 8, grid >= 2
    if rows >= 16:
        half = -(-rows // 2)                              # ceil(rows / 2)
        return -(-half // 8) * 8                          # round up to sublane mult
    return rows                                           # tiny: one full block


def center_intersection(embeddings, w1, b1, w2, b2, *, block_rows=None):
    """embeddings: (B, N, D); w1, w2: (D, D) torch layout (out, in); b1, b2: (D,)."""
    B, N, D = embeddings.shape

    # Lane-packing group: pack G batch rows along lanes so the working width
    # is 128 (full vreg lane width) instead of D.
    G = 128 // D if (D <= 128 and 128 % D == 0) else 1
    GD = G * D
    Bg = -(-B // G)                                       # packed batch rows

    if G > 1:
        # Pad B to a multiple of G (<= G-1 zero rows; fused with the packing
        # transform below), then pack: (Bg, G, N, D) -> (Bg, N, G*D).
        emb = embeddings
        if Bg * G != B:
            emb = jnp.pad(emb, ((0, Bg * G - B), (0, 0), (0, 0)))
        packed = emb.reshape(Bg, G, N, D).transpose(0, 2, 1, 3).reshape(Bg, N, GD)
        eye = jnp.eye(G, dtype=jnp.float32)
        w1p = jnp.kron(eye, w1.T.astype(jnp.float32))     # (GD, GD) block-diag
        w2p = jnp.kron(eye, w2.T.astype(jnp.float32))
        b1p = jnp.tile(b1.astype(jnp.float32), G).reshape(1, GD)
        b2p = jnp.tile(b2.astype(jnp.float32), G).reshape(1, GD)
    else:
        packed = embeddings
        w1p = w1.T.astype(jnp.float32)
        w2p = w2.T.astype(jnp.float32)
        b1p = b1.reshape(1, D).astype(jnp.float32)
        b2p = b2.reshape(1, D).astype(jnp.float32)

    if block_rows is None:
        block_rows = _pick_block_rows(Bg)
    block_rows = min(-(-block_rows // 8) * 8, Bg)         # sublane-mult or full
    grid = pl.cdiv(Bg, block_rows)                        # ragged last block OK

    cost = pl.CostEstimate(
        flops=int(4 * Bg * N * GD * GD),
        transcendentals=int(Bg * N * GD),
        bytes_accessed=int(4 * (Bg * N * GD + Bg * GD + 2 * GD * GD + 2 * GD)),
    )

    out2d = pl.pallas_call(
        _center_intersection_kernel,
        out_shape=jax.ShapeDtypeStruct((Bg, GD), embeddings.dtype),
        grid_spec=pltpu.PrefetchScalarGridSpec(
            num_scalar_prefetch=0,
            grid=(grid,),
            in_specs=[
                pl.BlockSpec((block_rows, N, GD), lambda i: (i, 0, 0)),
                pl.BlockSpec((GD, GD), lambda i: (0, 0)),
                pl.BlockSpec((1, GD), lambda i: (0, 0)),
                pl.BlockSpec((GD, GD), lambda i: (0, 0)),
                pl.BlockSpec((1, GD), lambda i: (0, 0)),
            ],
            out_specs=pl.BlockSpec((block_rows, GD), lambda i: (i, 0)),
        ),
        compiler_params=pltpu.CompilerParams(
            dimension_semantics=("parallel",)),
        cost_estimate=cost,
    )(packed, w1p, b1p, w2p, b2p)

    # Unpack lanes back to batch rows, drop padding, restore (B, 1, D).
    return out2d.reshape(Bg * G, D)[:B].reshape(B, 1, D)


def _reference(embeddings, w1, b1, w2, b2):
    # Pure-JAX (f32) reference matching the PyTorch forward exactly.
    h = jax.nn.relu(jnp.einsum("bnd,od->bno", embeddings, w1) + b1)
    logits = jnp.einsum("bnd,od->bno", h, w2) + b2
    att = jax.nn.softmax(logits, axis=1)
    return jnp.sum(att * embeddings, axis=1, keepdims=True)


if __name__ == "__main__":
    B, N, D = 2, 8, 32  # batch, num-conjuncts, hidden dim

    key = jax.random.PRNGKey(0)
    k_emb, k_w1, k_b1, k_w2, k_b2 = jax.random.split(key, 5)

    embeddings = jax.random.normal(k_emb, (B, N, D), dtype=jnp.float32)

    # Xavier-uniform weight init (fan_in = fan_out = D), default Linear bias init.
    xav = (6.0 / (D + D)) ** 0.5
    bbd = 1.0 / (D ** 0.5)
    w1 = jax.random.uniform(k_w1, (D, D), jnp.float32, -xav, xav)
    b1 = jax.random.uniform(k_b1, (D,), jnp.float32, -bbd, bbd)
    w2 = jax.random.uniform(k_w2, (D, D), jnp.float32, -xav, xav)
    b2 = jax.random.uniform(k_b2, (D,), jnp.float32, -bbd, bbd)

    out = center_intersection(embeddings, w1, b1, w2, b2)
    out = jax.block_until_ready(out)

    ref = _reference(embeddings, w1, b1, w2, b2)
    assert out.shape == (B, 1, D), out.shape
    # f32 matmuls + exact softmax divide: remaining deltas come only from
    # MXU/XLA default-precision differences between kernel and reference.
    assert jnp.allclose(out, ref, atol=1e-2, rtol=1e-2), "mismatch vs reference"

    print("KERNEL_OK")
</pallas_src>

<mosaic_0001>
module attributes {stable_mosaic.version = 11 : i64} {
  func.func @_center_intersection_kernel(%arg0: i32, %arg1: memref<1x8x128xf32, #tpu.memory_space<vmem>>, %arg2: memref<128x128xf32, #tpu.memory_space<vmem>>, %arg3: memref<1x128xf32, #tpu.memory_space<vmem>>, %arg4: memref<128x128xf32, #tpu.memory_space<vmem>>, %arg5: memref<1x128xf32, #tpu.memory_space<vmem>>, %arg6: memref<1x128xf32, #tpu.memory_space<vmem>>) attributes {dimension_semantics = [#tpu.dimension_semantics<parallel>], iteration_bounds = array<i64: 1>, scalar_prefetch = 0 : i64, scratch_operands = 0 : i64, tpu.core_type = #tpu.core_type<tc>, window_params = [{transform_indices = @transform_0, window_bounds = array<i64: 1, 8, 128>}, {pipeline_mode = #tpu.pipeline_mode<synchronous>, transform_indices = @transform_1, window_bounds = array<i64: 128, 128>}, {pipeline_mode = #tpu.pipeline_mode<synchronous>, transform_indices = @transform_2, window_bounds = array<i64: 1, 128>}, {pipeline_mode = #tpu.pipeline_mode<synchronous>, transform_indices = @transform_3, window_bounds = array<i64: 128, 128>}, {pipeline_mode = #tpu.pipeline_mode<synchronous>, transform_indices = @transform_4, window_bounds = array<i64: 1, 128>}, {transform_indices = @transform_5, window_bounds = array<i64: 1, 128>}]} {
    %c0 = arith.constant 0 : index
    %c0_0 = arith.constant 0 : index
    %c0_1 = arith.constant 0 : index
    %0 = vector.load %arg1[%c0, %c0_0, %c0_1] : memref<1x8x128xf32, #tpu.memory_space<vmem>>, vector<1x8x128xf32>
    %1 = vector.shape_cast %0 : vector<1x8x128xf32> to vector<8x128xf32>
    %c0_2 = arith.constant 0 : index
    %c0_3 = arith.constant 0 : index
    %2 = vector.load %arg2[%c0_2, %c0_3] : memref<128x128xf32, #tpu.memory_space<vmem>>, vector<128x128xf32>
    %cst = arith.constant dense<0.000000e+00> : vector<8x128xf32>
    %3 = tpu.matmul %1, %2, %cst {dimension_numbers = #tpu.dot_dimension_numbers<[1], [0], [0], [1], [0, 0, 1, 1], [], []>} : vector<8x128xf32>, vector<128x128xf32>, vector<8x128xf32> -> vector<8x128xf32>
    %c0_4 = arith.constant 0 : index
    %c0_5 = arith.constant 0 : index
    %4 = vector.load %arg3[%c0_4, %c0_5] : memref<1x128xf32, #tpu.memory_space<vmem>>, vector<1x128xf32>
    %5 = vector.broadcast %4 : vector<1x128xf32> to vector<8x128xf32>
    %6 = arith.addf %3, %5 : vector<8x128xf32>
    %cst_6 = arith.constant 0.000000e+00 : f32
    %7 = vector.broadcast %cst_6 : f32 to vector<8x128xf32>
    %8 = arith.maximumf %6, %7 : vector<8x128xf32>
    %c0_7 = arith.constant 0 : index
    %c0_8 = arith.constant 0 : index
    %9 = vector.load %arg4[%c0_7, %c0_8] : memref<128x128xf32, #tpu.memory_space<vmem>>, vector<128x128xf32>
    %cst_9 = arith.constant dense<0.000000e+00> : vector<8x128xf32>
    %10 = tpu.matmul %8, %9, %cst_9 {dimension_numbers = #tpu.dot_dimension_numbers<[1], [0], [0], [1], [0, 0, 1, 1], [], []>} : vector<8x128xf32>, vector<128x128xf32>, vector<8x128xf32> -> vector<8x128xf32>
    %c0_10 = arith.constant 0 : index
    %c0_11 = arith.constant 0 : index
    %11 = vector.load %arg5[%c0_10, %c0_11] : memref<1x128xf32, #tpu.memory_space<vmem>>, vector<1x128xf32>
    %12 = vector.broadcast %11 : vector<1x128xf32> to vector<8x128xf32>
    %13 = arith.addf %10, %12 : vector<8x128xf32>
    %14 = vector.shape_cast %13 : vector<8x128xf32> to vector<1x8x128xf32>
    %cst_12 = arith.constant dense<0xFF800000> : vector<1x128xf32>
    %15 = vector.multi_reduction <maximumf>, %14, %cst_12 [1] : vector<1x8x128xf32> to vector<1x128xf32>
    %16 = vector.shape_cast %15 : vector<1x128xf32> to vector<1x1x128xf32>
    %17 = vector.broadcast %16 : vector<1x1x128xf32> to vector<1x8x128xf32>
    %18 = arith.subf %14, %17 : vector<1x8x128xf32>
    %19 = math.exp %18 : vector<1x8x128xf32>
    %cst_13 = arith.constant dense<0.000000e+00> : vector<1x128xf32>
    %20 = vector.multi_reduction <add>, %19, %cst_13 [1] : vector<1x8x128xf32> to vector<1x128xf32>
    %21 = arith.mulf %19, %0 : vector<1x8x128xf32>
    %cst_14 = arith.constant dense<0.000000e+00> : vector<1x128xf32>
    %22 = vector.multi_reduction <add>, %21, %cst_14 [1] : vector<1x8x128xf32> to vector<1x128xf32>
    %23 = arith.divf %22, %20 : vector<1x128xf32>
    %c0_15 = arith.constant 0 : index
    %c0_16 = arith.constant 0 : index
    %24 = vector.load %arg6[%c0_15, %c0_16] : memref<1x128xf32, #tpu.memory_space<vmem>>, vector<1x128xf32>
    tpu.vector_store %arg6[%c0_15, %c0_16], %23 {strides = array<i32>} : memref<1x128xf32, #tpu.memory_space<vmem>>, vector<1x128xf32>,
    return
  }
  func.func @transform_0(%arg0: i32) -> (i32, i32, i32) {
    %c0_i32 = arith.constant 0 : i32
    %c0_i32_0 = arith.constant 0 : i32
    %c0_i32_1 = arith.constant 0 : i32
    return %arg0, %c0_i32, %c0_i32_0 : i32, i32, i32
  }
  func.func @transform_1(%arg0: i32) -> (i32, i32) {
    %c0_i32 = arith.constant 0 : i32
    %c0_i32_0 = arith.constant 0 : i32
    %c0_i32_1 = arith.constant 0 : i32
    return %c0_i32, %c0_i32_0 : i32, i32
  }
  func.func @transform_2(%arg0: i32) -> (i32, i32) {
    %c0_i32 = arith.constant 0 : i32
    %c0_i32_0 = arith.constant 0 : i32
    %c0_i32_1 = arith.constant 0 : i32
    return %c0_i32, %c0_i32_0 : i32, i32
  }
  func.func @transform_3(%arg0: i32) -> (i32, i32) {
    %c0_i32 = arith.constant 0 : i32
    %c0_i32_0 = arith.constant 0 : i32
    %c0_i32_1 = arith.constant 0 : i32
    return %c0_i32, %c0_i32_0 : i32, i32
  }
  func.func @transform_4(%arg0: i32) -> (i32, i32) {
    %c0_i32 = arith.constant 0 : i32
    %c0_i32_0 = arith.constant 0 : i32
    %c0_i32_1 = arith.constant 0 : i32
    return %c0_i32, %c0_i32_0 : i32, i32
  }
  func.func @transform_5(%arg0: i32) -> (i32, i32) {
    %c0_i32 = arith.constant 0 : i32
    %c0_i32_0 = arith.constant 0 : i32
    return %arg0, %c0_i32 : i32, i32
  }
}

</mosaic_0001>

<bundles_post_ra>
// kernel: tpu_custom_call.1
= control target key start
LH: loop header
LB: loop body
LE: loop exit
PB: predicated region body
PF: predicated region fallthrough
CT: control target
= control target key end

     0   :  { %10 = vsyncpa [#allocation3], 0  ;;  %s583_s0 = inlined_call_operand.hbm [shape: f32[1,8,128], index: 0, kind: input, shape index: {}]   ;;  %s584_s1 = inlined_call_operand.hbm [shape: f32[128,128], index: 1, kind: input, shape index: {}]   ;;  %s585_s2 = inlined_call_operand.vmem [shape: f32[1,128], index: 2, kind: input, shape index: {}]   ;;  %s586_s3 = inlined_call_operand.hbm [shape: f32[128,128], index: 3, kind: input, shape index: {}]   ;;  %s587_s4 = inlined_call_operand.vmem [shape: f32[1,128], index: 4, kind: input, shape index: {}]   ;;  %s588_s5 = inlined_call_operand.hbm [shape: f32[1,128], index: 5, kind: output, shape index: {}]  }
   0x1   :  { %11 = vsyncpa [#allocation6], 0 }
   0x2   :  { %12 = vsyncpa [#allocation4], 0  ;;  %s493_s18 = smov [#allocation5]  }
   0x3   :  { %s28_s19 = sshll.u32 %s493_s18, 4  ;;  %s29_s19 = int_to_ptr.vmem [resolvable:$true] %s28_s19 }
   0x4   :  { %s415_s20 = scalar_lea.vmem %s29_s19, 2048  ;;  %p420_p1 = scmp.lt.s32.totalorder %s29_s19, %s29_s19 }
   0x5   :  { %p416_p0 = scmp.ne.s32.totalorder %s29_s19, %s415_s20  ;;  %p421_p2 = scmp.lt.s32.totalorder %s415_s20, %s415_s20 }
   0x7   :  { %p422_p3 = por %p421_p2, %p420_p1 }
   0x9   :  { %p423_p4 = pnand %p422_p3, %p416_p0 }
   0xb   :  { %426 = shalt.err (!%p423_p4)
}
   0xc   :  { %s494_s21 = smov 128   ;;  %s495_s22 = smov 8  }
   0xd   :  { %34 = dma.hbm_to_vmem [thread:$0]  %s584_s1, 2048, %s29_s19, [#allocation6], %s494_s21, %s494_s21, %s495_s22  }
   0xe   :  { %s496_s25 = smov [#allocation2]   ;;  %s497_s27 = smov [#allocation7]  }
   0xf   :  { %s19_s26 = sshll.u32 %s496_s25, 4  ;;  %s42_s28 = sshll.u32 %s497_s27, 4  ;;  %s20_s26 = int_to_ptr.vmem [resolvable:$true] %s19_s26  ;;  %s43_s28 = int_to_ptr.vmem [resolvable:$true] %s42_s28 }
  0x10   :  { %s435_s29 = scalar_lea.vmem %s20_s26, 128  ;;  %p440_p6 = scmp.lt.s32.totalorder %s20_s26, %s20_s26 }
  0x11   :  { %p436_p5 = scmp.ne.s32.totalorder %s20_s26, %s435_s29  ;;  %p441_p7 = scmp.lt.s32.totalorder %s435_s29, %s435_s29 }
  0x13   :  { %p442_p8 = por %p441_p7, %p440_p6 }
  0x15   :  { %p443_p9 = pnand %p442_p8, %p436_p5 }
  0x17   :  { %446 = shalt.err (!%p443_p9)
}
  0x18   :  { %22 = dma.hbm_to_vmem [thread:$0]  %s583_s0, 128, %s20_s26, [#allocation3]  }
  0x19   :  { %s455_s7 = scalar_lea.vmem %s43_s28, 2048  ;;  %p460_p11 = scmp.lt.s32.totalorder %s43_s28, %s43_s28 }
  0x1a   :  { %p456_p10 = scmp.ne.s32.totalorder %s43_s28, %s455_s7  ;;  %p461_p12 = scmp.lt.s32.totalorder %s455_s7, %s455_s7 }
  0x1c   :  { %p462_p13 = por %p461_p12, %p460_p11 }
  0x1e   :  { %p463_p0 = pnand %p462_p13, %p456_p10 }
  0x20   :  { %466 = shalt.err (!%p463_p0)
}
  0x21   :  { %48 = dma.hbm_to_vmem [thread:$0]  %s586_s3, 2048, %s43_s28, [#allocation6], %s494_s21, %s494_s21, %s495_s22  }
  0x22   :  { %487 = dma.done.wait [#allocation3], 128  }
  0x23   :  { %488 = vsyncadd [#allocation3], 4294967168 }
  0x24   :  { %489 = dma.done.wait [#allocation6], 4096  }
  0x25   :  { %490 = vsyncadd [#allocation6], 4294963200  ;;  %v498_v0 = vmov 0.0   ;;  %vm499_vm0 = vmmov 0   ;;  %v76_v1 = vld [vmem:[#allocation5 + $0x78] sm:$0xff]  ;;  %v75_v2 = vld [vmem:[#allocation5 + $0x70] sm:$0xff] }
  0x26   :  { %325 = vmatprep.subr.mxu0 %v498_v0  ;;  %357 = vmatprep.mubr.msk.f32.mxu0 %vm499_vm0, %v498_v0  ;;  %v74_v3 = vld [vmem:[#allocation5 + $0x68] sm:$0xff]  ;;  %v73_v4 = vld [vmem:[#allocation5 + $0x60] sm:$0xff]  ;;  %v170_v5 = vld [vmem:[#allocation7 + $0x78] sm:$0xff] }
  0x27   :  { %360 = vmatprep.subr.mxu1 %v498_v0  ;;  %392 = vmatprep.mubr.msk.f32.mxu1 %vm499_vm0, %v498_v0  ;;  %v72_v6 = vld [vmem:[#allocation5 + $0x58] sm:$0xff]  ;;  %v169_v7 = vld [vmem:[#allocation7 + $0x70] sm:$0xff]  ;;  %v168_v8 = vld [vmem:[#allocation7 + $0x68] sm:$0xff] }
  0x28   :  { %326 = vmatpush3.msra.mxu0 %v76_v1  ;;  %361 = vmatpush3.msra.mxu1 %v170_v5  ;;  %v71_v9 = vld [vmem:[#allocation5 + $0x50] sm:$0xff]  ;;  %v167_v10 = vld [vmem:[#allocation7 + $0x60] sm:$0xff]  ;;  %v70_v11 = vld [vmem:[#allocation5 + $0x48] sm:$0xff] }
  0x29   :  { %327 = vmatprep.subr.mxu0 %v498_v0  ;;  %362 = vmatprep.subr.mxu1 %v498_v0  ;;  %v166_v12 = vld [vmem:[#allocation7 + $0x58] sm:$0xff]  ;;  %v69_v13 = vld [vmem:[#allocation5 + $0x40] sm:$0xff]  ;;  %v165_v14 = vld [vmem:[#allocation7 + $0x50] sm:$0xff] }
  0x2a   :  { %328 = vmatpush3.msra.mxu0 %v75_v2  ;;  %363 = vmatpush3.msra.mxu1 %v169_v7  ;;  %v68_v15 = vld [vmem:[#allocation5 + $0x38] sm:$0xff]  ;;  %v164_v16 = vld [vmem:[#allocation7 + $0x48] sm:$0xff]  ;;  %v67_v17 = vld [vmem:[#allocation5 + $0x30] sm:$0xff] }
  0x2b   :  { %329 = vmatprep.subr.mxu0 %v498_v0  ;;  %364 = vmatprep.subr.mxu1 %v498_v0  ;;  %v163_v18 = vld [vmem:[#allocation7 + $0x40] sm:$0xff]  ;;  %v66_v19 = vld [vmem:[#allocation5 + $0x28] sm:$0xff]  ;;  %v162_v20 = vld [vmem:[#allocation7 + $0x38] sm:$0xff] }
  0x2c   :  { %330 = vmatpush3.msra.mxu0 %v74_v3  ;;  %365 = vmatpush3.msra.mxu1 %v168_v8  ;;  %v65_v21 = vld [vmem:[#allocation5 + $0x20] sm:$0xff]  ;;  %v161_v22 = vld [vmem:[#allocation7 + $0x30] sm:$0xff]  ;;  %v64_v23 = vld [vmem:[#allocation5 + $0x18] sm:$0xff] }
  0x2d   :  { %331 = vmatprep.subr.mxu0 %v498_v0  ;;  %366 = vmatprep.subr.mxu1 %v498_v0  ;;  %v160_v24 = vld [vmem:[#allocation7 + $0x28] sm:$0xff]  ;;  %v63_v25 = vld [vmem:[#allocation5 + $0x10] sm:$0xff]  ;;  %v159_v26 = vld [vmem:[#allocation7 + $0x20] sm:$0xff] }
  0x2e   :  { %332 = vmatpush3.msra.mxu0 %v73_v4  ;;  %367 = vmatpush3.msra.mxu1 %v167_v10  ;;  %v62_v27 = vld [vmem:[#allocation5 + $0x8] sm:$0xff]  ;;  %v158_v28 = vld [vmem:[#allocation7 + $0x18] sm:$0xff]  ;;  %v61_v29 = vld [vmem:[#allocation5] sm:$0xff] }
  0x2f   :  { %333 = vmatprep.subr.mxu0 %v498_v0  ;;  %368 = vmatprep.subr.mxu1 %v498_v0  ;;  %v60_v30 = vld [vmem:[#allocation2] sm:$0xff]  ;;  %v157_v31 = vld [vmem:[#allocation7 + $0x10] sm:$0xff]  ;;  %v156_v32 = vld [vmem:[#allocation7 + $0x8] sm:$0xff] }
  0x30   :  { %334 = vmatpush3.msra.mxu0 %v72_v6  ;;  %369 = vmatpush3.msra.mxu1 %v166_v12  ;;  %v155_v33 = vld [vmem:[#allocation7] sm:$0xff]  ;;  %v289_v34 = vld [vmem:[%s585_s2] ss:$0 sm:$0xff]  ;;  %s500_s2 = smov [#allocation8]  }
  0x31   :  { %335 = vmatprep.subr.mxu0 %v498_v0  ;;  %370 = vmatprep.subr.mxu1 %v498_v0  ;;  %v290_v39 = vld [vmem:[%s587_s4] ss:$0 sm:$0xff]  ;;  %s279_s4 = sshll.u32 %s500_s2, 4  ;;  %s280_s4 = int_to_ptr.vmem [resolvable:$true] %s279_s4 }
  0x32   :  { %336 = vmatpush3.msra.mxu0 %v71_v9  ;;  %371 = vmatpush3.msra.mxu1 %v165_v14  ;;  %s467_s11 = scalar_lea.vmem %s280_s4, 16  ;;  %s471_s12 = scalar_lea.vmem %s280_s4, 32 }
  0x33   :  { %337 = vmatprep.subr.mxu0 %v498_v0  ;;  %372 = vmatprep.subr.mxu1 %v498_v0  ;;  %p468_p1 = scmp.ne.s32.totalorder %s280_s4, %s467_s11  ;;  %p472_p2 = scmp.lt.s32.totalorder %s280_s4, %s280_s4 }
  0x34   :  { %338 = vmatpush3.msra.mxu0 %v70_v11  ;;  %373 = vmatpush3.msra.mxu1 %v164_v16  ;;  %p473_p3 = scmp.lt.s32.totalorder %s471_s12, %s467_s11 }
  0x35   :  { %339 = vmatprep.subr.mxu0 %v498_v0  ;;  %374 = vmatprep.subr.mxu1 %v498_v0 }
  0x36   :  { %340 = vmatpush3.msra.mxu0 %v69_v13  ;;  %375 = vmatpush3.msra.mxu1 %v163_v18  ;;  %p474_p4 = por %p473_p3, %p472_p2 }
  0x37   :  { %341 = vmatprep.subr.mxu0 %v498_v0  ;;  %376 = vmatprep.subr.mxu1 %v498_v0 }
  0x38   :  { %342 = vmatpush3.msra.mxu0 %v68_v15  ;;  %377 = vmatpush3.msra.mxu1 %v162_v20  ;;  %p475_p5 = pnand %p474_p4, %p468_p1 }
  0x39   :  { %343 = vmatprep.subr.mxu0 %v498_v0  ;;  %378 = vmatprep.subr.mxu1 %v498_v0 }
  0x3a   :  { %344 = vmatpush3.msra.mxu0 %v67_v17  ;;  %379 = vmatpush3.msra.mxu1 %v161_v22 }
  0x3b   :  { %345 = vmatprep.subr.mxu0 %v498_v0  ;;  %380 = vmatprep.subr.mxu1 %v498_v0 }
  0x3c   :  { %346 = vmatpush3.msra.mxu0 %v66_v19  ;;  %381 = vmatpush3.msra.mxu1 %v160_v24 }
  0x3d   :  { %347 = vmatprep.subr.mxu0 %v498_v0  ;;  %382 = vmatprep.subr.mxu1 %v498_v0 }
  0x3e   :  { %348 = vmatpush3.msra.mxu0 %v65_v21  ;;  %383 = vmatpush3.msra.mxu1 %v159_v26 }
  0x3f   :  { %349 = vmatprep.subr.mxu0 %v498_v0  ;;  %384 = vmatprep.subr.mxu1 %v498_v0 }
  0x40   :  { %350 = vmatpush3.msra.mxu0 %v64_v23  ;;  %385 = vmatpush3.msra.mxu1 %v158_v28 }
  0x41   :  { %351 = vmatprep.subr.mxu0 %v498_v0  ;;  %386 = vmatprep.subr.mxu1 %v498_v0 }
  0x42   :  { %352 = vmatpush3.msra.mxu0 %v63_v25  ;;  %387 = vmatpush3.msra.mxu1 %v157_v31 }
  0x43   :  { %353 = vmatprep.subr.mxu0 %v498_v0  ;;  %388 = vmatprep.subr.mxu1 %v498_v0 }
  0x44   :  { %354 = vmatpush3.msra.mxu0 %v62_v27  ;;  %389 = vmatpush3.msra.mxu1 %v156_v32 }
  0x45   :  { %355 = vmatprep.subr.mxu0 %v498_v0  ;;  %390 = vmatprep.subr.mxu1 %v498_v0 }
  0x46   :  { %356 = vmatpush3.msra.mxu0 %v61_v29  ;;  %391 = vmatpush3.msra.mxu1 %v155_v33 }
  0x47   :  { %358 = vmatmul.mubr.f32.vlgmr.msra.gmra.mxu0 %v60_v30 }
 0x107   :  { %v150_v35 = vpop.f32.mrf.mxu0 }
 0x108   :  { %v151_v36 = vadd.f32 %v289_v34, %v150_v35 }
 0x109   :  { %v359_v37 = vpop.f32.mrf.mxu0 }
 0x10a   :  { %v154_v38 = vmax.f32 %v151_v36, 0.0 }
 0x10c   :  { %393 = vmatmul.mubr.f32.vlgmr.msra.gmra.mxu1 %v154_v38 }
 0x1cc   :  { %v244_v40 = vpop.f32.mrf.mxu1 }
 0x1cd   :  { %v245_v41 = vadd.f32 %v290_v39, %v244_v40 }
 0x1ce   :  { %v394_v42 = vpop.f32.mrf.mxu1 }
 0x1cf   :  { %v248_v43 = vrot.slane %v245_v41, 4 }
 0x1d1   :  { %v249_v44 = vmax.f32 %v245_v41, %v248_v43 }
 0x1d3   :  { %v250_v45 = vrot.slane %v249_v44, 2 }
 0x1d5   :  { %v251_v46 = vmax.f32 %v249_v44, %v250_v45 }
 0x1d7   :  { %v252_v47 = vrot.slane %v251_v46, 1 }
 0x1d9   :  { %v253_v48 = vmax.f32 %v251_v46, %v252_v47 }
 0x1db   :  { %v254_v49 = vsub.f32 %v245_v41, %v253_v48 }
 0x1dd   :  { %v255_v50 = vmul.f32 1.442695, %v254_v49 }
 0x1df   :  { %403 = vpow2.f32 %v255_v50 }
 0x1ec   :  { %v404_v51 = vpop.eup %403 }
 0x1ed   :  { %v257_v52 = vrot.slane %v404_v51, 4  ;;  %v263_v53 = vmul.f32 %v404_v51, %v60_v30 }
 0x1ef   :  { %v258_v54 = vadd.f32 %v404_v51, %v257_v52  ;;  %v264_v56 = vrot.slane %v263_v53, 4 }
 0x1f1   :  { %v259_v55 = vrot.slane %v258_v54, 2  ;;  %v265_v59 = vadd.f32 %v264_v56, %v263_v53 }
 0x1f3   :  { %v260_v57 = vadd.f32 %v259_v55, %v258_v54  ;;  %v266_v61 = vrot.slane %v265_v59, 2 }
 0x1f5   :  { %v261_v58 = vrot.slane %v260_v57, 1  ;;  %v267_v62 = vadd.f32 %v266_v61, %v265_v59 }
 0x1f7   :  { %v262_v60 = vadd.f32 %v261_v58, %v260_v57  ;;  %v268_v63 = vrot.slane %v267_v62, 1 }
 0x1f9   :  { %405 = vrcp.f32 %v262_v60  ;;  %v269_v0 = vadd.f32 %v268_v63, %v267_v62 }
 0x206   :  { %v406_v1 = vpop.eup %405 }
 0x207   :  { %v271_v2 = vmul.f32 %v406_v1, %v269_v0 }
 0x209   :  { %272 = vst [vmem:[#allocation8] sm:$0x1] %v271_v2 }
 0x20a   :  { %478 = shalt.err (!%p475_p5)
}
 0x20b   :  { %282 = dma.vmem_to_hbm [thread:$0]  %s280_s4, 16, %s588_s5, [#allocation4]  }
 0x20c   :  { %491 = dma.done.wait [#allocation4], 16  }
 0x20d   :  { %492 = vsyncadd [#allocation4], 4294967280 }
 0x20e   :  { %286 = vsyncpa [#allocation3], 1 }
 0x20f   :  { %287 = vsyncpa [#allocation6], 1 }
 0x210   :  { %288 = vsyncpa [#allocation4], 1 }

</bundles_post_ra>
